<compile_context>
chip_gen: v7x
topology: tpu7x:2x2x1
jax: 0.10.0
libtpu: 0.0.40
codegen_flags: <defaults>
</compile_context>

<pallas_src>
import functools

import jax
import jax.numpy as jnp
from jax import lax
from jax.experimental import pallas as pl
from jax.experimental.pallas import tpu as pltpu

EPS = 1e-5
HID0, HID1, OUT = 100, 50, 10
PAD = 128  # lane-aligned width used for every hidden / output dimension
NEG_BIG = -1.0e30


def _bn_affine(h, gamma, beta):
    """Training-mode BatchNorm1d folded into a per-channel affine."""
    mean = jnp.mean(h, axis=0, keepdims=True)
    var = jnp.mean(jnp.square(h - mean), axis=0, keepdims=True)
    scale = gamma * lax.rsqrt(var + EPS)          # (1, C): EUP rsqrt, cheap
    shift = beta - mean * scale
    return h * scale + shift                      # 2 VALU ops / element


def modeld_kernel(x_ref, w0_ref, w1_ref, w2_ref, gb_ref, out_ref):
    x = x_ref[...]
    gb = gb_ref[...]          # (6, 128): [g0, b0, g1, b1, g2, b2], lane-padded

    # fc0 (bias dropped: no-op under training BN) -> bn0 -> relu
    h = jnp.dot(x, w0_ref[...], preferred_element_type=jnp.float32)
    h = jnp.maximum(_bn_affine(h, gb[0:1, :], gb[1:2, :]), 0.0)

    # fc1 -> bn1 -> relu
    h = jnp.dot(h, w1_ref[...], preferred_element_type=jnp.float32)
    h = jnp.maximum(_bn_affine(h, gb[2:3, :], gb[3:4, :]), 0.0)

    # fc2 -> bn2   (lane-padded to 128; padded lanes stay exactly 0)
    h = jnp.dot(h, w2_ref[...], preferred_element_type=jnp.float32)
    h = _bn_affine(h, gb[4:5, :], gb[5:6, :])

    # Mask padded class lanes, then log_softmax along dim=1 over real classes.
    col = lax.broadcasted_iota(jnp.int32, (1, PAD), 1)
    h = jnp.where(col < OUT, h, NEG_BIG)
    m = jnp.max(h, axis=1, keepdims=True)
    z = h - m
    lse = jnp.log(jnp.sum(jnp.exp(z), axis=1, keepdims=True))
    out_ref[...] = (z - lse).astype(out_ref.dtype)   # full 128-lane store


@functools.partial(jax.jit, static_argnames=("image_size",))
def modeld_forward(x, kernel_params, *, image_size):
    x2d = x.reshape(-1, image_size)
    B = x2d.shape[0]
    w0p, w1p, w2p, gb = kernel_params

    flops = 2 * B * (w0p.shape[0] * w0p.shape[1]
                     + w1p.shape[0] * w1p.shape[1]
                     + w2p.shape[0] * w2p.shape[1])
    bytes_accessed = 4 * (x2d.size + w0p.size + w1p.size + w2p.size
                          + gb.size + B * PAD)
    transcendentals = B * (PAD + 1) + 3 * PAD        # exp/log + rsqrt, roughly

    vmem = pl.BlockSpec(memory_space=pltpu.MemorySpace.VMEM)
    out_padded = pl.pallas_call(
        modeld_kernel,
        out_shape=jax.ShapeDtypeStruct((B, PAD), jnp.float32),
        in_specs=[vmem] * 5,
        out_specs=vmem,
        cost_estimate=pl.CostEstimate(
            flops=int(flops),
            transcendentals=int(transcendentals),
            bytes_accessed=int(bytes_accessed)),
        compiler_params=pltpu.CompilerParams(
            vmem_limit_bytes=32 * 1024 * 1024),
    )(x2d, w0p, w1p, w2p, gb)
    return out_padded[:, :OUT]       # layout plumbing only, outside the kernel


def init_params(key, image_size):
    """PyTorch-like parameters per layer: (W_(in,out), bias, gamma, beta)."""
    dims = [(image_size, HID0), (HID0, HID1), (HID1, OUT)]
    params = []
    for i, (din, dout) in enumerate(dims):
        k_w, k_b, k_g, k_be = jax.random.split(jax.random.fold_in(key, i), 4)
        scale = 1.0 / jnp.sqrt(jnp.float32(din))
        w = jax.random.uniform(k_w, (din, dout), jnp.float32, -scale, scale)
        b = jax.random.uniform(k_b, (1, dout), jnp.float32, -scale, scale)
        gamma = 1.0 + 0.1 * jax.random.normal(k_g, (1, dout), jnp.float32)
        beta = 0.1 * jax.random.normal(k_be, (1, dout), jnp.float32)
        params.append((w, b, gamma, beta))
    return params


def pack_kernel_params(params, image_size):
    """Lane-pad weights to 128-wide outputs, pack gamma/beta into one slab.

    Padded channels get zero weights and gamma = beta = 0, so they remain
    exactly zero through BN/ReLU and contribute nothing downstream; the
    padded class lanes are masked out before log_softmax inside the kernel.
    Linear biases are intentionally dropped (no effect under training BN).
    """
    (w0, _, g0, be0), (w1, _, g1, be1), (w2, _, g2, be2) = params

    w0p = jnp.zeros((image_size, PAD), jnp.float32).at[:, :HID0].set(w0)
    w1p = jnp.zeros((PAD, PAD), jnp.float32).at[:HID0, :HID1].set(w1)
    w2p = jnp.zeros((PAD, PAD), jnp.float32).at[:HID1, :OUT].set(w2)

    gb = jnp.zeros((6, PAD), jnp.float32)
    gb = gb.at[0, :HID0].set(g0[0]).at[1, :HID0].set(be0[0])
    gb = gb.at[2, :HID1].set(g1[0]).at[3, :HID1].set(be1[0])
    gb = gb.at[4, :OUT].set(g2[0]).at[5, :OUT].set(be2[0])
    return (w0p, w1p, w2p, gb)


def reference_forward(x, params, image_size):
    """Pure-JAX reference matching PyTorch ModelD (training-mode BN, biases
    included — they cancel under BN, proving the kernel's bias removal)."""
    h = x.reshape(-1, image_size)
    for i, (w, b, g, be) in enumerate(params):
        h = h @ w + b
        mean = jnp.mean(h, axis=0, keepdims=True)
        var = jnp.mean((h - mean) ** 2, axis=0, keepdims=True)
        h = (h - mean) * lax.rsqrt(var + EPS) * g + be
        if i < 2:
            h = jnp.maximum(h, 0.0)
    return jax.nn.log_softmax(h, axis=1)


if __name__ == "__main__":
    IMAGE_SIZE = 64   # flattened 8x8 image
    BATCH = 8

    key = jax.random.PRNGKey(0)
    k_x, k_p = jax.random.split(key)
    x = jax.random.normal(k_x, (BATCH, 1, 8, 8), jnp.float32)
    params = init_params(k_p, IMAGE_SIZE)
    kernel_params = pack_kernel_params(params, IMAGE_SIZE)

    out = modeld_forward(x, kernel_params, image_size=IMAGE_SIZE)
    out = jax.block_until_ready(out)

    ref = reference_forward(x, params, IMAGE_SIZE)
    assert out.shape == (BATCH, OUT)
    assert jnp.allclose(out, ref, atol=1e-4, rtol=1e-4), "mismatch vs reference"
    print("KERNEL_OK")
</pallas_src>

<mosaic_0001>
module attributes {stable_mosaic.version = 11 : i64} {
  func.func @modeld_kernel(%arg0: memref<8x64xf32, #tpu.memory_space<vmem>>, %arg1: memref<64x128xf32, #tpu.memory_space<vmem>>, %arg2: memref<128x128xf32, #tpu.memory_space<vmem>>, %arg3: memref<128x128xf32, #tpu.memory_space<vmem>>, %arg4: memref<6x128xf32, #tpu.memory_space<vmem>>, %arg5: memref<8x128xf32, #tpu.memory_space<vmem>>) attributes {dimension_semantics = [], scalar_prefetch = 0 : i64, scratch_operands = 0 : i64, tpu.core_type = #tpu.core_type<tc>} {
    %c0 = arith.constant 0 : index
    %c0_0 = arith.constant 0 : index
    %0 = vector.load %arg0[%c0, %c0_0] : memref<8x64xf32, #tpu.memory_space<vmem>>, vector<8x64xf32>
    %c0_1 = arith.constant 0 : index
    %c0_2 = arith.constant 0 : index
    %1 = vector.load %arg4[%c0_1, %c0_2] : memref<6x128xf32, #tpu.memory_space<vmem>>, vector<6x128xf32>
    %c0_3 = arith.constant 0 : index
    %c0_4 = arith.constant 0 : index
    %2 = vector.load %arg1[%c0_3, %c0_4] : memref<64x128xf32, #tpu.memory_space<vmem>>, vector<64x128xf32>
    %cst = arith.constant dense<0.000000e+00> : vector<8x128xf32>
    %3 = tpu.matmul %0, %2, %cst {dimension_numbers = #tpu.dot_dimension_numbers<[1], [0], [0], [1], [0, 0, 1, 1], [], []>} : vector<8x64xf32>, vector<64x128xf32>, vector<8x128xf32> -> vector<8x128xf32>
    %4 = vector.extract_strided_slice %1 {offsets = [0, 0], sizes = [1, 128], strides = [1, 1]} : vector<6x128xf32> to vector<1x128xf32>
    %5 = vector.extract_strided_slice %1 {offsets = [1, 0], sizes = [1, 128], strides = [1, 1]} : vector<6x128xf32> to vector<1x128xf32>
    %cst_5 = arith.constant dense<0.000000e+00> : vector<128xf32>
    %6 = vector.multi_reduction <add>, %3, %cst_5 [0] : vector<8x128xf32> to vector<128xf32>
    %7 = vector.shape_cast %6 : vector<128xf32> to vector<1x128xf32>
    %cst_6 = arith.constant 8.000000e+00 : f32
    %8 = vector.broadcast %cst_6 : f32 to vector<1x128xf32>
    %9 = arith.divf %7, %8 : vector<1x128xf32>
    %10 = vector.broadcast %9 : vector<1x128xf32> to vector<8x128xf32>
    %11 = arith.subf %3, %10 : vector<8x128xf32>
    %12 = arith.mulf %11, %11 : vector<8x128xf32>
    %cst_7 = arith.constant dense<0.000000e+00> : vector<128xf32>
    %13 = vector.multi_reduction <add>, %12, %cst_7 [0] : vector<8x128xf32> to vector<128xf32>
    %14 = vector.shape_cast %13 : vector<128xf32> to vector<1x128xf32>
    %cst_8 = arith.constant 8.000000e+00 : f32
    %15 = vector.broadcast %cst_8 : f32 to vector<1x128xf32>
    %16 = arith.divf %14, %15 : vector<1x128xf32>
    %cst_9 = arith.constant 9.99999974E-6 : f32
    %17 = vector.broadcast %cst_9 : f32 to vector<1x128xf32>
    %18 = arith.addf %16, %17 : vector<1x128xf32>
    %19 = math.rsqrt %18 : vector<1x128xf32>
    %20 = arith.mulf %4, %19 : vector<1x128xf32>
    %21 = arith.mulf %9, %20 : vector<1x128xf32>
    %22 = arith.subf %5, %21 : vector<1x128xf32>
    %23 = vector.broadcast %20 : vector<1x128xf32> to vector<8x128xf32>
    %24 = arith.mulf %3, %23 : vector<8x128xf32>
    %25 = vector.broadcast %22 : vector<1x128xf32> to vector<8x128xf32>
    %26 = arith.addf %24, %25 : vector<8x128xf32>
    %cst_10 = arith.constant 0.000000e+00 : f32
    %27 = vector.broadcast %cst_10 : f32 to vector<8x128xf32>
    %28 = arith.maximumf %26, %27 : vector<8x128xf32>
    %c0_11 = arith.constant 0 : index
    %c0_12 = arith.constant 0 : index
    %29 = vector.load %arg2[%c0_11, %c0_12] : memref<128x128xf32, #tpu.memory_space<vmem>>, vector<128x128xf32>
    %cst_13 = arith.constant dense<0.000000e+00> : vector<8x128xf32>
    %30 = tpu.matmul %28, %29, %cst_13 {dimension_numbers = #tpu.dot_dimension_numbers<[1], [0], [0], [1], [0, 0, 1, 1], [], []>} : vector<8x128xf32>, vector<128x128xf32>, vector<8x128xf32> -> vector<8x128xf32>
    %31 = vector.extract_strided_slice %1 {offsets = [2, 0], sizes = [1, 128], strides = [1, 1]} : vector<6x128xf32> to vector<1x128xf32>
    %32 = vector.extract_strided_slice %1 {offsets = [3, 0], sizes = [1, 128], strides = [1, 1]} : vector<6x128xf32> to vector<1x128xf32>
    %cst_14 = arith.constant dense<0.000000e+00> : vector<128xf32>
    %33 = vector.multi_reduction <add>, %30, %cst_14 [0] : vector<8x128xf32> to vector<128xf32>
    %34 = vector.shape_cast %33 : vector<128xf32> to vector<1x128xf32>
    %cst_15 = arith.constant 8.000000e+00 : f32
    %35 = vector.broadcast %cst_15 : f32 to vector<1x128xf32>
    %36 = arith.divf %34, %35 : vector<1x128xf32>
    %37 = vector.broadcast %36 : vector<1x128xf32> to vector<8x128xf32>
    %38 = arith.subf %30, %37 : vector<8x128xf32>
    %39 = arith.mulf %38, %38 : vector<8x128xf32>
    %cst_16 = arith.constant dense<0.000000e+00> : vector<128xf32>
    %40 = vector.multi_reduction <add>, %39, %cst_16 [0] : vector<8x128xf32> to vector<128xf32>
    %41 = vector.shape_cast %40 : vector<128xf32> to vector<1x128xf32>
    %cst_17 = arith.constant 8.000000e+00 : f32
    %42 = vector.broadcast %cst_17 : f32 to vector<1x128xf32>
    %43 = arith.divf %41, %42 : vector<1x128xf32>
    %cst_18 = arith.constant 9.99999974E-6 : f32
    %44 = vector.broadcast %cst_18 : f32 to vector<1x128xf32>
    %45 = arith.addf %43, %44 : vector<1x128xf32>
    %46 = math.rsqrt %45 : vector<1x128xf32>
    %47 = arith.mulf %31, %46 : vector<1x128xf32>
    %48 = arith.mulf %36, %47 : vector<1x128xf32>
    %49 = arith.subf %32, %48 : vector<1x128xf32>
    %50 = vector.broadcast %47 : vector<1x128xf32> to vector<8x128xf32>
    %51 = arith.mulf %30, %50 : vector<8x128xf32>
    %52 = vector.broadcast %49 : vector<1x128xf32> to vector<8x128xf32>
    %53 = arith.addf %51, %52 : vector<8x128xf32>
    %cst_19 = arith.constant 0.000000e+00 : f32
    %54 = vector.broadcast %cst_19 : f32 to vector<8x128xf32>
    %55 = arith.maximumf %53, %54 : vector<8x128xf32>
    %c0_20 = arith.constant 0 : index
    %c0_21 = arith.constant 0 : index
    %56 = vector.load %arg3[%c0_20, %c0_21] : memref<128x128xf32, #tpu.memory_space<vmem>>, vector<128x128xf32>
    %cst_22 = arith.constant dense<0.000000e+00> : vector<8x128xf32>
    %57 = tpu.matmul %55, %56, %cst_22 {dimension_numbers = #tpu.dot_dimension_numbers<[1], [0], [0], [1], [0, 0, 1, 1], [], []>} : vector<8x128xf32>, vector<128x128xf32>, vector<8x128xf32> -> vector<8x128xf32>
    %58 = vector.extract_strided_slice %1 {offsets = [4, 0], sizes = [1, 128], strides = [1, 1]} : vector<6x128xf32> to vector<1x128xf32>
    %59 = vector.extract_strided_slice %1 {offsets = [5, 0], sizes = [1, 128], strides = [1, 1]} : vector<6x128xf32> to vector<1x128xf32>
    %cst_23 = arith.constant dense<0.000000e+00> : vector<128xf32>
    %60 = vector.multi_reduction <add>, %57, %cst_23 [0] : vector<8x128xf32> to vector<128xf32>
    %61 = vector.shape_cast %60 : vector<128xf32> to vector<1x128xf32>
    %cst_24 = arith.constant 8.000000e+00 : f32
    %62 = vector.broadcast %cst_24 : f32 to vector<1x128xf32>
    %63 = arith.divf %61, %62 : vector<1x128xf32>
    %64 = vector.broadcast %63 : vector<1x128xf32> to vector<8x128xf32>
    %65 = arith.subf %57, %64 : vector<8x128xf32>
    %66 = arith.mulf %65, %65 : vector<8x128xf32>
    %cst_25 = arith.constant dense<0.000000e+00> : vector<128xf32>
    %67 = vector.multi_reduction <add>, %66, %cst_25 [0] : vector<8x128xf32> to vector<128xf32>
    %68 = vector.shape_cast %67 : vector<128xf32> to vector<1x128xf32>
    %cst_26 = arith.constant 8.000000e+00 : f32
    %69 = vector.broadcast %cst_26 : f32 to vector<1x128xf32>
    %70 = arith.divf %68, %69 : vector<1x128xf32>
    %cst_27 = arith.constant 9.99999974E-6 : f32
    %71 = vector.broadcast %cst_27 : f32 to vector<1x128xf32>
    %72 = arith.addf %70, %71 : vector<1x128xf32>
    %73 = math.rsqrt %72 : vector<1x128xf32>
    %74 = arith.mulf %58, %73 : vector<1x128xf32>
    %75 = arith.mulf %63, %74 : vector<1x128xf32>
    %76 = arith.subf %59, %75 : vector<1x128xf32>
    %77 = vector.broadcast %74 : vector<1x128xf32> to vector<8x128xf32>
    %78 = arith.mulf %57, %77 : vector<8x128xf32>
    %79 = vector.broadcast %76 : vector<1x128xf32> to vector<8x128xf32>
    %80 = arith.addf %78, %79 : vector<8x128xf32>
    %81 = tpu.iota {dimensions = array<i32: 1>} : vector<1x128xi32>
    %c10_i32 = arith.constant 10 : i32
    %82 = vector.broadcast %c10_i32 : i32 to vector<1x128xi32>
    %83 = arith.cmpi slt, %81, %82 : vector<1x128xi32>
    %cst_28 = arith.constant -1.000000e+30 : f32
    %84 = vector.shape_cast %83 : vector<1x128xi1> to vector<1x128xi1>
    %85 = vector.broadcast %84 : vector<1x128xi1> to vector<8x128xi1>
    %86 = vector.broadcast %cst_28 : f32 to vector<8x128xf32>
    %87 = arith.select %85, %80, %86 : vector<8x128xi1>, vector<8x128xf32>
    %cst_29 = arith.constant dense<0xFF800000> : vector<8xf32>
    %88 = vector.multi_reduction <maximumf>, %87, %cst_29 [1] : vector<8x128xf32> to vector<8xf32>
    %89 = vector.shape_cast %88 : vector<8xf32> to vector<8x1xf32>
    %90 = vector.broadcast %89 : vector<8x1xf32> to vector<8x128xf32>
    %91 = arith.subf %87, %90 : vector<8x128xf32>
    %92 = math.exp %91 : vector<8x128xf32>
    %cst_30 = arith.constant dense<0.000000e+00> : vector<8xf32>
    %93 = vector.multi_reduction <add>, %92, %cst_30 [1] : vector<8x128xf32> to vector<8xf32>
    %94 = vector.shape_cast %93 : vector<8xf32> to vector<8x1xf32>
    %95 = math.log %94 : vector<8x1xf32>
    %96 = vector.broadcast %95 : vector<8x1xf32> to vector<8x128xf32>
    %97 = arith.subf %91, %96 : vector<8x128xf32>
    %c0_31 = arith.constant 0 : index
    %c0_32 = arith.constant 0 : index
    %98 = vector.load %arg5[%c0_31, %c0_32] : memref<8x128xf32, #tpu.memory_space<vmem>>, vector<8x128xf32>
    tpu.vector_store %arg5[%c0_31, %c0_32], %97 {strides = array<i32>} : memref<8x128xf32, #tpu.memory_space<vmem>>, vector<8x128xf32>,
    return
  }
}

</mosaic_0001>

<bundles_post_ra>
// kernel: modeld_forward.1
= control target key start
LH: loop header
LB: loop body
LE: loop exit
PB: predicated region body
PF: predicated region fallthrough
CT: control target
= control target key end

     0   :  { %10 = vsyncpa [#allocation3], 0  ;;  %s871_s0 = inlined_call_operand.vmem [shape: f32[8,64], index: 0, kind: input, shape index: {}]   ;;  %s872_s1 = inlined_call_operand.vmem [shape: f32[64,128], index: 1, kind: input, shape index: {}]   ;;  %s873_s2 = inlined_call_operand.hbm [shape: f32[128,128], index: 2, kind: input, shape index: {}]   ;;  %s874_s3 = inlined_call_operand.hbm [shape: f32[128,128], index: 3, kind: input, shape index: {}]   ;;  %s875_s4 = inlined_call_operand.vmem [shape: f32[6,128], index: 4, kind: input, shape index: {}]   ;;  %s876_s5 = inlined_call_operand.hbm [shape: f32[8,128], index: 5, kind: output, shape index: {}]  }
   0x1   :  { %11 = vsyncpa [#allocation6], 0 }
   0x2   :  { %12 = vsyncpa [#allocation4], 0  ;;  %s726_s18 = smov [#allocation2]   ;;  %s654_s22 = scalar_lea.hbm %s873_s2, 2048 }
   0x3   :  { %s22_s19 = sshll.u32 %s726_s18, 4  ;;  %p655_p0 = scmp.ne.s32.totalorder %s873_s2, %s654_s22  ;;  %s23_s19 = int_to_ptr.vmem [resolvable:$true] %s22_s19 }
   0x4   :  { %p658_p1 = scmp.lt.u32.totalorder %s654_s22, %s873_s2 }
   0x6   :  { %p660_p2 = pnand %p658_p1, %p655_p0 }
   0x8   :  { %663 = shalt.err (!%p660_p2)
}
   0x9   :  { %s664_s27 = scalar_lea.vmem %s23_s19, 2048  ;;  %p669_p4 = scmp.lt.s32.totalorder %s23_s19, %s23_s19 }
   0xa   :  { %p665_p3 = scmp.ne.s32.totalorder %s23_s19, %s664_s27  ;;  %p670_p5 = scmp.lt.s32.totalorder %s664_s27, %s664_s27 }
   0xc   :  { %p671_p6 = por %p670_p5, %p669_p4 }
   0xe   :  { %p672_p7 = pnand %p671_p6, %p665_p3 }
  0x10   :  { %675 = shalt.err (!%p672_p7)
}
  0x11   :  { %s727_s28 = smov 128   ;;  %s728_s29 = smov 8  }
  0x12   :  { %28 = dma.hbm_to_vmem [thread:$0]  %s873_s2, 2048, %s23_s19, [#allocation3], %s727_s28, %s727_s28, %s728_s29  }
  0x13   :  { %s729_s7 = smov [#allocation5]   ;;  %s676_s11 = scalar_lea.hbm %s874_s3, 2048 }
  0x14   :  { %s34_s8 = sshll.u32 %s729_s7, 4  ;;  %p677_p8 = scmp.ne.s32.totalorder %s874_s3, %s676_s11  ;;  %s35_s8 = int_to_ptr.vmem [resolvable:$true] %s34_s8 }
  0x15   :  { %p680_p9 = scmp.lt.u32.totalorder %s676_s11, %s874_s3 }
  0x17   :  { %p682_p10 = pnand %p680_p9, %p677_p8 }
  0x19   :  { %685 = shalt.err (!%p682_p10)
}
  0x1a   :  { %s686_s16 = scalar_lea.vmem %s35_s8, 2048  ;;  %p691_p12 = scmp.lt.s32.totalorder %s35_s8, %s35_s8 }
  0x1b   :  { %p687_p11 = scmp.ne.s32.totalorder %s35_s8, %s686_s16  ;;  %p692_p13 = scmp.lt.s32.totalorder %s686_s16, %s686_s16 }
  0x1d   :  { %p693_p0 = por %p692_p13, %p691_p12 }
  0x1f   :  { %p694_p1 = pnand %p693_p0, %p687_p11 }
  0x21   :  { %697 = shalt.err (!%p694_p1)
}
  0x22   :  { %40 = dma.hbm_to_vmem [thread:$0]  %s874_s3, 2048, %s35_s8, [#allocation6], %s727_s28, %s727_s28, %s728_s29  }
  0x23   :  { %720 = dma.done.wait [#allocation3], 2048  }
  0x24   :  { %721 = vsyncadd [#allocation3], 4294965248 }
  0x25   :  { %722 = dma.done.wait [#allocation6], 2048  }
  0x26   :  { %723 = vsyncadd [#allocation6], 4294965248  ;;  %v730_v0 = vmov 0.0|0.0   ;;  %vm731_vm0 = vmmov 0   ;;  %v732_v1 = vmov 0.0   ;;  %v51_v2 = vld [vmem:[%s872_s1] sm:$0xff]  ;;  %v158_v58 = vlaneseq }
  0x27   :  { %576 = vmatprep.subr.bf16.mxu0 %v730_v0  ;;  %503 = vmatprep.mubr.msk.f32.mxu0 %vm731_vm0, %v732_v1  ;;  %v52_v3 = vld [vmem:[%s872_s1 + $0x8] sm:$0xff]  ;;  %v53_v4 = vld [vmem:[%s872_s1 + $0x10] sm:$0xff]  ;;  %v54_v6 = vld [vmem:[%s872_s1 + $0x18] sm:$0xff]  ;;  %vm59_vm1 = vcmask 523264  }
  0x28   :  { %588 = vmatprep.subr.bf16.mxu1 %v730_v0  ;;  %538 = vmatprep.mubr.msk.f32.mxu1 %vm731_vm0, %v732_v1  ;;  %v577_v5 = vpack.c.bf16 %v52_v3, %v51_v2  ;;  %v580_v7 = vpack.c.bf16 %v54_v6, %v53_v4  ;;  %v55_v8 = vld [vmem:[%s872_s1 + $0x20] sm:$0xff]  ;;  %v56_v9 = vld [vmem:[%s872_s1 + $0x28] sm:$0xff]  ;;  %v57_v11 = vld [vmem:[%s872_s1 + $0x30] sm:$0xff]  ;;  %v832_v59 = vshrl.u32 %v158_v58, 7 }
  0x29   :  { %v583_v10 = vpack.c.bf16 %v56_v9, %v55_v8  ;;  %v58_v12 = vld [vmem:[%s872_s1 + $0x38] sm:$0xff]  ;;  %v49_v14 = vld [vmem:[%s871_s0] sm:$0xff]  ;;  %v170_v16 = vld [vmem:[#allocation2 + $0x8] sm:$0xff] }
  0x2a   :  { %578 = vmatpush3.bf16.msra.mxu0 %v577_v5  ;;  %v586_v13 = vpack.c.bf16 %v58_v12, %v57_v11  ;;  %v169_v15 = vld [vmem:[#allocation2] sm:$0xff]  ;;  %v171_v18 = vld [vmem:[#allocation2 + $0x10] sm:$0xff]  ;;  %v172_v19 = vld [vmem:[#allocation2 + $0x18] sm:$0xff]  ;;  %v160_v63 = vsub.s32 0, %v832_v59  ;;  %v165_v4 = vsub.s32 1, %v832_v59 }
  0x2b   :  { %579 = vmatprep.subr.bf16.mxu0 %v730_v0  ;;  %v589_v17 = vpack.c.bf16 %v170_v16, %v169_v15  ;;  %v592_v20 = vpack.c.bf16 %v172_v19, %v171_v18  ;;  %v173_v21 = vld [vmem:[#allocation2 + $0x20] sm:$0xff]  ;;  %v174_v22 = vld [vmem:[#allocation2 + $0x28] sm:$0xff]  ;;  %v175_v24 = vld [vmem:[#allocation2 + $0x30] sm:$0xff] }
  0x2c   :  { %v595_v23 = vpack.c.bf16 %v174_v22, %v173_v21  ;;  %v176_v25 = vld [vmem:[#allocation2 + $0x38] sm:$0xff]  ;;  %v177_v27 = vld [vmem:[#allocation2 + $0x40] sm:$0xff]  ;;  %v178_v28 = vld [vmem:[#allocation2 + $0x48] sm:$0xff] }
  0x2d   :  { %590 = vmatpush3.bf16.msra.mxu1 %v589_v17  ;;  %v598_v26 = vpack.c.bf16 %v176_v25, %v175_v24  ;;  %v601_v29 = vpack.c.bf16 %v178_v28, %v177_v27  ;;  %v179_v30 = vld [vmem:[#allocation2 + $0x50] sm:$0xff]  ;;  %v180_v31 = vld [vmem:[#allocation2 + $0x58] sm:$0xff]  ;;  %v181_v33 = vld [vmem:[#allocation2 + $0x60] sm:$0xff] }
  0x2e   :  { %581 = vmatpush3.bf16.msra.mxu0 %v580_v7  ;;  %591 = vmatprep.subr.bf16.mxu1 %v730_v0  ;;  %v604_v32 = vpack.c.bf16 %v180_v31, %v179_v30  ;;  %v182_v34 = vld [vmem:[#allocation2 + $0x68] sm:$0xff]  ;;  %v183_v35 = vld [vmem:[#allocation2 + $0x70] sm:$0xff]  ;;  %v184_v37 = vld [vmem:[#allocation2 + $0x78] sm:$0xff] }
  0x2f   :  { %582 = vmatprep.subr.bf16.mxu0 %v730_v0  ;;  %v607_v36 = vpack.c.bf16 %v182_v34, %v181_v33  ;;  %v610_v38 = vpack.c.bf16 %v184_v37, %v183_v35  ;;  %v837_v60 = vld [vmem:[%s875_s4] sm:$0x3f]  ;;  %v291_v11 = vld [vmem:[#allocation5 + $0x8] sm:$0xff]  ;;  %v296_v19 = vld [vmem:[#allocation5 + $0x30] sm:$0xff]  ;;  %s733_s4 = smov [#allocation7]  }
  0x30   :  { %v294_v16 = vld [vmem:[#allocation5 + $0x20] sm:$0xff]  ;;  %v295_v17 = vld [vmem:[#allocation5 + $0x28] sm:$0xff]  ;;  %v300_v25 = vld [vmem:[#allocation5 + $0x50] sm:$0xff]  ;;  %s433_s10 = sshll.u32 %s733_s4, 4  ;;  %s434_s10 = int_to_ptr.vmem [resolvable:$true] %s433_s10 }
  0x31   :  { %593 = vmatpush3.bf16.msra.mxu1 %v592_v20  ;;  %v619_v18 = vpack.c.bf16 %v295_v17, %v294_v16  ;;  %v297_v20 = vld [vmem:[#allocation5 + $0x38] sm:$0xff]  ;;  %v298_v22 = vld [vmem:[#allocation5 + $0x40] sm:$0xff]  ;;  %v304_v31 = vld [vmem:[#allocation5 + $0x70] sm:$0xff]  ;;  %s698_s11 = scalar_lea.vmem %s434_s10, 128  ;;  %p703_p3 = scmp.lt.s32.totalorder %s434_s10, %s434_s10 }
  0x32   :  { %584 = vmatpush3.bf16.msra.mxu0 %v583_v10  ;;  %594 = vmatprep.subr.bf16.mxu1 %v730_v0  ;;  %v290_v10 = vld [vmem:[#allocation5] sm:$0xff]  ;;  %v622_v21 = vpack.c.bf16 %v297_v20, %v296_v19  ;;  %p699_p2 = scmp.ne.s32.totalorder %s434_s10, %s698_s11  ;;  %p704_p4 = scmp.lt.s32.totalorder %s698_s11, %s698_s11 }
  0x33   :  { %585 = vmatprep.subr.bf16.mxu0 %v730_v0  ;;  %v613_v12 = vpack.c.bf16 %v291_v11, %v290_v10  ;;  %v302_v28 = vld [vmem:[#allocation5 + $0x60] sm:$0xff] }
  0x34   :  { %p705_p5 = por %p704_p4, %p703_p3 }
  0x35   :  { %596 = vmatpush3.bf16.msra.mxu1 %v595_v23  ;;  %v299_v23 = vld [vmem:[#allocation5 + $0x48] sm:$0xff] }
  0x36   :  { %587 = vmatpush3.bf16.msra.mxu0 %v586_v13  ;;  %597 = vmatprep.subr.bf16.mxu1 %v730_v0  ;;  %v292_v13 = vld [vmem:[#allocation5 + $0x10] sm:$0xff]  ;;  %v625_v24 = vpack.c.bf16 %v299_v23, %v298_v22  ;;  %p706_p6 = pnand %p705_p5, %p699_p2 }
  0x37   :  { %612 = vmatprep.subr.bf16.mxu0 %v730_v0 }
  0x39   :  { %504 = vmatmul.mubr.msk.f32.vlgmr.msra.gmra.mrb[0].mxu0 %vm59_vm1, %v49_v14  ;;  %599 = vmatpush3.bf16.msra.mxu1 %v598_v26  ;;  %v293_v14 = vld [vmem:[#allocation5 + $0x18] sm:$0xff] }
  0x3a   :  { %573 = vmatprep.mubr.msk.f32.mxu0 %vm731_vm0, %v732_v1  ;;  %600 = vmatprep.subr.bf16.mxu1 %v730_v0  ;;  %v616_v15 = vpack.c.bf16 %v293_v14, %v292_v13  ;;  %v301_v26 = vld [vmem:[#allocation5 + $0x58] sm:$0xff] }
  0x3b   :  { %614 = vmatpush3.bf16.msra.mxu0 %v613_v12  ;;  %v628_v27 = vpack.c.bf16 %v301_v26, %v300_v25  ;;  %v402_v25 = vsub.s32 4, %v832_v59 }
  0x3c   :  { %615 = vmatprep.subr.bf16.mxu0 %v730_v0 }
  0x3d   :  { %602 = vmatpush3.bf16.msra.mxu1 %v601_v29  ;;  %v303_v29 = vld [vmem:[#allocation5 + $0x68] sm:$0xff] }
  0x3e   :  { %603 = vmatprep.subr.bf16.mxu1 %v730_v0  ;;  %v631_v30 = vpack.c.bf16 %v303_v29, %v302_v28  ;;  %v407_v29 = vsub.s32 5, %v832_v59 }
  0x3f   :  { %617 = vmatpush3.bf16.msra.mxu0 %v616_v15 }
  0x40   :  { %618 = vmatprep.subr.bf16.mxu0 %v730_v0 }
  0x41   :  { %605 = vmatpush3.bf16.msra.mxu1 %v604_v32  ;;  %v305_v32 = vld [vmem:[#allocation5 + $0x78] sm:$0xff] }
  0x42   :  { %606 = vmatprep.subr.bf16.mxu1 %v730_v0  ;;  %v634_v33 = vpack.c.bf16 %v305_v32, %v304_v31 }
  0x43   :  { %620 = vmatpush3.bf16.msra.mxu0 %v619_v18 }
  0x44   :  { %621 = vmatprep.subr.bf16.mxu0 %v730_v0 }
  0x45   :  { %608 = vmatpush3.bf16.msra.mxu1 %v607_v36 }
  0x46   :  { %609 = vmatprep.subr.bf16.mxu1 %v730_v0 }
  0x47   :  { %623 = vmatpush3.bf16.msra.mxu0 %v622_v21 }
  0x48   :  { %624 = vmatprep.subr.bf16.mxu0 %v730_v0 }
  0x49   :  { %611 = vmatpush3.bf16.msra.mxu1 %v610_v38 }
  0x4b   :  { %626 = vmatpush3.bf16.msra.mxu0 %v625_v24 }
  0x4c   :  { %627 = vmatprep.subr.bf16.mxu0 %v730_v0 }
  0x4f   :  { %629 = vmatpush3.bf16.msra.mxu0 %v628_v27 }
  0x50   :  { %630 = vmatprep.subr.bf16.mxu0 %v730_v0 }
  0x53   :  { %632 = vmatpush3.bf16.msra.mxu0 %v631_v30  ;;  %v411_v30 = vand.u32 127, %v158_v58 }
  0x54   :  { %633 = vmatprep.subr.bf16.mxu0 %v730_v0 }
  0x55   :  { %vm412_vm2 = vcmp.lt.s32.totalorder %v411_v30, 10 }
  0x57   :  { %635 = vmatpush3.bf16.msra.mxu0 %v634_v33 }
 0x10c   :  { %v129_v39 = vpop.f32.mrb[0].mxu0 }
 0x10d   :  { %v133_v40 = vrot.slane %v129_v39, 4  ;;  %v505_v41 = vpop.f32.mrb[1].mxu0 }
 0x10f   :  { %v134_v42 = vadd.f32 %v133_v40, %v129_v39 }
 0x111   :  { %v135_v43 = vrot.slane %v134_v42, 2 }
 0x113   :  { %v136_v44 = vadd.f32 %v135_v43, %v134_v42 }
 0x115   :  { %v137_v45 = vrot.slane %v136_v44, 1 }
 0x117   :  { %v138_v46 = vadd.f32 %v137_v45, %v136_v44 }
 0x119   :  { %v140_v47 = vmul.f32 0.125, %v138_v46 }
 0x11b   :  { %v141_v48 = vsub.f32 %v129_v39, %v140_v47 }
 0x11d   :  { %v142_v49 = vmul.f32 %v141_v48, %v141_v48 }
 0x11f   :  { %v143_v50 = vrot.slane %v142_v49, 4 }
 0x121   :  { %v144_v51 = vadd.f32 %v143_v50, %v142_v49 }
 0x123   :  { %v145_v52 = vrot.slane %v144_v51, 2 }
 0x125   :  { %v146_v53 = vadd.f32 %v145_v52, %v144_v51 }
 0x127   :  { %v147_v54 = vrot.slane %v146_v53, 1 }
 0x129   :  { %v148_v55 = vadd.f32 %v147_v54, %v146_v53  ;;  %v281_v54 = vsub.s32 2, %v832_v59 }
 0x12b   :  { %v149_v56 = vmul.f32 0.125, %v148_v55 }
 0x12d   :  { %v150_v57 = vadd.f32 1e-05, %v149_v56 }
 0x12f   :  { %644 = vrsqrt.f32 %v150_v57 }
 0x139   :  { %v645_v61 = vpop.eup %644 }
 0x13a   :  { %v152_v62 = vmul.f32 %v645_v61, %v837_v60  ;;  %v286_v61 = vsub.s32 3, %v832_v59 }
 0x13c   :  { %v153_v1 = vmul.f32 %v152_v62, %v140_v47  ;;  %v161_v3 = vrot.slane %v152_v62, %v160_v63 }
 0x13e   :  { %v155_v2 = vrot.slane %v153_v1, 7  ;;  %v162_v6 = vmul.f32 %v161_v3, %v129_v39 }
 0x140   :  { %v157_v5 = vsub.f32 %v837_v60, %v155_v2 }
 0x142   :  { %v166_v7 = vrot.slane %v157_v5, %v165_v4 }
 0x144   :  { %v167_v8 = vadd.f32 %v166_v7, %v162_v6 }
 0x146   :  { %v168_v9 = vmax.f32 %v167_v8, 0.0 }
 0x148   :  { %539 = vmatmul.mubr.f32.vlgmr.msra.gmra.mrb[0].mxu1 %v168_v9 }
 0x21b   :  { %v251_v34 = vpop.f32.mrb[0].mxu1 }
 0x21c   :  { %v255_v35 = vrot.slane %v251_v34, 4  ;;  %v540_v36 = vpop.f32.mrb[1].mxu1 }
 0x21e   :  { %v256_v37 = vadd.f32 %v255_v35, %v251_v34 }
 0x220   :  { %v257_v38 = vrot.slane %v256_v37, 2 }
 0x222   :  { %v258_v39 = vadd.f32 %v257_v38, %v256_v37 }
 0x224   :  { %v259_v40 = vrot.slane %v258_v39, 1 }
 0x226   :  { %v260_v41 = vadd.f32 %v259_v40, %v258_v39 }
 0x228   :  { %v261_v42 = vmul.f32 0.125, %v260_v41 }
 0x22a   :  { %v262_v43 = vsub.f32 %v251_v34, %v261_v42 }
 0x22c   :  { %v263_v44 = vmul.f32 %v262_v43, %v262_v43 }
 0x22e   :  { %v264_v45 = vrot.slane %v263_v44, 4 }
 0x230   :  { %v265_v46 = vadd.f32 %v264_v45, %v263_v44 }
 0x232   :  { %v266_v47 = vrot.slane %v265_v46, 2 }
 0x234   :  { %v267_v48 = vadd.f32 %v266_v47, %v265_v46 }
 0x236   :  { %v268_v0 = vrot.slane %v267_v48, 1 }
 0x238   :  { %v269_v49 = vadd.f32 %v268_v0, %v267_v48 }
 0x23a   :  { %v270_v50 = vmul.f32 0.125, %v269_v49 }
 0x23c   :  { %v271_v51 = vadd.f32 1e-05, %v270_v50 }
 0x23e   :  { %646 = vrsqrt.f32 %v271_v51 }
 0x248   :  { %v647_v52 = vpop.eup %646 }
 0x249   :  { %v273_v53 = vmul.f32 %v647_v52, %v837_v60 }
 0x24b   :  { %v274_v55 = vmul.f32 %v273_v53, %v261_v42  ;;  %v282_v57 = vrot.slane %v273_v53, %v281_v54 }
 0x24d   :  { %v276_v56 = vrot.slane %v274_v55, 7  ;;  %v283_v63 = vmul.f32 %v282_v57, %v251_v34 }
 0x24f   :  { %v278_v62 = vsub.f32 %v837_v60, %v276_v56 }
 0x251   :  { %v287_v1 = vrot.slane %v278_v62, %v286_v61 }
 0x253   :  { %v288_v2 = vadd.f32 %v287_v1, %v283_v63 }
 0x255   :  { %v289_v3 = vmax.f32 %v288_v2, 0.0 }
 0x257   :  { %574 = vmatmul.mubr.f32.vlgmr.msra.gmra.mrb[2].mxu0 %v289_v3 }
 0x32a   :  { %v372_v4 = vpop.f32.mrb[2].mxu0 }
 0x32b   :  { %v376_v5 = vrot.slane %v372_v4, 4  ;;  %v575_v6 = vpop.f32.mrb[3].mxu0 }
 0x32d   :  { %v377_v7 = vadd.f32 %v376_v5, %v372_v4 }
 0x32f   :  { %v378_v8 = vrot.slane %v377_v7, 2 }
 0x331   :  { %v379_v9 = vadd.f32 %v378_v8, %v377_v7 }
 0x333   :  { %v380_v10 = vrot.slane %v379_v9, 1 }
 0x335   :  { %v381_v11 = vadd.f32 %v380_v10, %v379_v9 }
 0x337   :  { %v382_v12 = vmul.f32 0.125, %v381_v11 }
 0x339   :  { %v383_v13 = vsub.f32 %v372_v4, %v382_v12 }
 0x33b   :  { %v384_v14 = vmul.f32 %v383_v13, %v383_v13 }
 0x33d   :  { %v385_v15 = vrot.slane %v384_v14, 4 }
 0x33f   :  { %v386_v16 = vadd.f32 %v385_v15, %v384_v14 }
 0x341   :  { %v387_v17 = vrot.slane %v386_v16, 2 }
 0x343   :  { %v388_v18 = vadd.f32 %v387_v17, %v386_v16 }
 0x345   :  { %v389_v19 = vrot.slane %v388_v18, 1 }
 0x347   :  { %v390_v20 = vadd.f32 %v389_v19, %v388_v18 }
 0x349   :  { %v391_v21 = vmul.f32 0.125, %v390_v20 }
 0x34b   :  { %v392_v22 = vadd.f32 1e-05, %v391_v21 }
 0x34d   :  { %648 = vrsqrt.f32 %v392_v22 }
 0x357   :  { %v649_v23 = vpop.eup %648 }
 0x358   :  { %v394_v24 = vmul.f32 %v649_v23, %v837_v60 }
 0x35a   :  { %v395_v26 = vmul.f32 %v394_v24, %v382_v12  ;;  %v403_v28 = vrot.slane %v394_v24, %v402_v25 }
 0x35c   :  { %v397_v27 = vrot.slane %v395_v26, 7  ;;  %v404_v32 = vmul.f32 %v403_v28, %v372_v4 }
 0x35e   :  { %v399_v31 = vsub.f32 %v837_v60, %v397_v27 }
 0x360   :  { %v408_v33 = vrot.slane %v399_v31, %v407_v29 }
 0x362   :  { %v409_v34 = vadd.f32 %v408_v33, %v404_v32 }
 0x364   :  { %v415_v35 = vsel %vm412_vm2, %v409_v34, -1e+30 }
 0x365   :  { %416 = vmax.xlane.f32.xlu0 %v415_v35 }
 0x3f2   :  { %v417_v36 = vpop.xlane.xlu0 %416 }
 0x3f3   :  { %v418_v37 = vsub.f32 %v415_v35, %v417_v36 }
 0x3f5   :  { %v419_v38 = vmul.f32 1.442695, %v418_v37 }
 0x3f7   :  { %650 = vpow2.f32 %v419_v38 }
 0x401   :  { %v651_v39 = vpop.eup %650 }
 0x402   :  { %421 = vadd.xlane.f32.xlu0 %v651_v39 }
 0x48f   :  { %v422_v40 = vpop.xlane.xlu0 %421 }
 0x490   :  { %652 = vlog2.f32 %v422_v40 }
 0x49a   :  { %v653_v41 = vpop.eup %652 }
 0x49b   :  { %v424_v58 = vmul.f32 0.6931472, %v653_v41 }
 0x49d   :  { %v425_v59 = vsub.f32 %v418_v37, %v424_v58 }
 0x49f   :  { %426 = vst [vmem:[#allocation7] sm:$0xff] %v425_v59 }
 0x4a0   :  { %709 = shalt.err (!%p706_p6)
}
 0x4a1   :  { %s710_s14 = scalar_lea.hbm %s876_s5, 128 }
 0x4a2   :  { %p711_p7 = scmp.ne.s32.totalorder %s876_s5, %s710_s14  ;;  %p714_p8 = scmp.lt.u32.totalorder %s710_s14, %s876_s5 }
 0x4a4   :  { %p716_p9 = pnand %p714_p8, %p711_p7 }
 0x4a6   :  { %719 = shalt.err (!%p716_p9)
}
 0x4a7   :  { %436 = dma.vmem_to_hbm [thread:$0]  %s434_s10, 128, %s876_s5, [#allocation4]  }
 0x4a8   :  { %724 = dma.done.wait [#allocation4], 128  }
 0x4a9   :  { %725 = vsyncadd [#allocation4], 4294967168 }
 0x4aa   :  { %440 = vsyncpa [#allocation3], 1 }
 0x4ab   :  { %441 = vsyncpa [#allocation6], 1 }
 0x4ac   :  { %442 = vsyncpa [#allocation4], 1 }

</bundles_post_ra>
